<compile_context>
chip_gen: v7x
topology: tpu7x:2x2x1
jax: 0.10.0
libtpu: 0.0.40
codegen_flags: <defaults>
</compile_context>

<pallas_src>
import functools

import jax
import jax.numpy as jnp
from jax.experimental import pallas as pl
from jax.experimental.pallas import tpu as pltpu

_LANE = 128      # vreg lane width: last dim of every tile padded to this
_SUBLANE = 8     # f32 sublane tile: batch padded to a multiple of this


def _round_up(n, m):
    return ((n + m - 1) // m) * m


def _fused_mlp_kernel(x_ref, *refs, num_layers, compute_dtype):
    """Whole MLP on one batch tile.

    x_ref: (TB, IN_pad); refs = (w0, b0, ..., w_{L-1}, b_{L-1}, o_ref),
    all lane-dense (last dims multiples of 128). Weights are VMEM-resident;
    activations stay in-kernel between layers.
    """
    o_ref = refs[-1]
    h = x_ref[...].astype(jnp.float32)
    for layer in range(num_layers):
        w = refs[2 * layer][...]
        b = refs[2 * layer + 1][...]
        acc = jnp.dot(h.astype(compute_dtype), w.astype(compute_dtype),
                      preferred_element_type=jnp.float32)
        acc = acc + b.astype(jnp.float32)          # bias on f32 accumulator
        if layer < num_layers - 1:
            acc = jnp.maximum(acc, 0.0)            # ReLU on f32 accumulator
        h = acc
    o_ref[...] = h.astype(o_ref.dtype)


def init_params(key, input_size, output_size, n_hidden_layers, network_width):
    """Deterministic init mirroring the nn.Linear stack; W stored (in, out)."""
    sizes = [input_size] + [network_width] * n_hidden_layers + [output_size]
    params = []
    for i in range(len(sizes) - 1):
        fan_in, fan_out = sizes[i], sizes[i + 1]
        key, kw, kb = jax.random.split(key, 3)
        bound = 1.0 / jnp.sqrt(jnp.float32(fan_in))
        w = jax.random.uniform(kw, (fan_in, fan_out), jnp.float32, -bound, bound)
        b = jax.random.uniform(kb, (fan_out,), jnp.float32, -bound, bound)
        params.append((w, b))
    return params


def prepare_params(params):
    """One-time zero-padding of every layer to lane-dense (x128) shapes.

    Also reshapes biases to (1, OUT_pad) once (no per-call reshape).
    """
    padded = []
    for w, b in params:
        fan_in, fan_out = w.shape
        in_p = _round_up(fan_in, _LANE)
        out_p = _round_up(fan_out, _LANE)
        w_p = jnp.zeros((in_p, out_p), w.dtype).at[:fan_in, :fan_out].set(w)
        b_p = jnp.zeros((1, out_p), b.dtype).at[0, :fan_out].set(b)
        padded.append((w_p, b_p))
    return {"layers": padded, "out_features": params[-1][0].shape[1]}


def dense_neural_network_forward(x, prepared, *, compute_dtype=jnp.float32):
    """Forward: flatten, n hidden Linear+ReLU, final Linear — one pallas_call."""
    layers = prepared["layers"]
    out_features = prepared["out_features"]
    num_layers = len(layers)

    B = x.shape[0]
    h = x.reshape(B, -1)                    # == torch.flatten(x, 1)
    in_features = h.shape[1]
    in_pad = layers[0][0].shape[0]
    out_pad = layers[-1][0].shape[1]

    # Batch padded to sublane multiple, tiled so large batches pipeline and
    # can be sharded across TensorCores; small batches collapse to one tile.
    b_pad = _round_up(max(B, _SUBLANE), _SUBLANE)
    tb = min(256, b_pad)                    # batch tile (multiple of 8)
    b_pad = _round_up(b_pad, tb)
    x_p = jnp.zeros((b_pad, in_pad), h.dtype).at[:B, :in_features].set(h)

    grid = (b_pad // tb,)

    in_specs = [pl.BlockSpec((tb, in_pad), lambda i: (i, 0))]
    flat_wb = []
    for w_p, b_p in layers:
        in_specs.append(pl.BlockSpec(w_p.shape, lambda i: (0, 0)))  # resident
        in_specs.append(pl.BlockSpec(b_p.shape, lambda i: (0, 0)))  # resident
        flat_wb += [w_p, b_p]

    kernel = functools.partial(_fused_mlp_kernel,
                               num_layers=num_layers,
                               compute_dtype=compute_dtype)

    out_p = pl.pallas_call(
        kernel,
        out_shape=jax.ShapeDtypeStruct((b_pad, out_pad), x.dtype),
        grid=grid,
        in_specs=in_specs,
        out_specs=pl.BlockSpec((tb, out_pad), lambda i: (i, 0)),
        compiler_params=pltpu.CompilerParams(
            dimension_semantics=("parallel",),   # megacore sharding on v7x
        ),
    )(x_p, *flat_wb)

    # Slice back to the true (B, output_size) result.
    return out_p[:B, :out_features]


if __name__ == "__main__":
    key = jax.random.PRNGKey(0)
    k_x, k_p = jax.random.split(key)

    # Small shapes consistent with the module: NCHW input flattened to features.
    B, C, H, W = 2, 4, 16, 16
    input_size = C * H * W          # 1024
    output_size = 8
    n_hidden_layers = 3
    network_width = 32

    x = jax.random.normal(k_x, (B, C, H, W), jnp.float32)
    params = init_params(k_p, input_size, output_size, n_hidden_layers,
                         network_width)
    prepared = prepare_params(params)

    # f32 operands here to keep the 1e-5 reference tolerance; pass
    # compute_dtype=jnp.bfloat16 for MXU throughput on v6e/v7x (tol ~1e-2).
    out = dense_neural_network_forward(x, prepared)
    out = jax.block_until_ready(out)

    # Reference check in plain JAX (same math, no Pallas, no padding).
    h = x.reshape(B, -1)
    for w_, b_ in params[:-1]:
        h = jnp.maximum(h @ w_ + b_, 0.0)
    ref = h @ params[-1][0] + params[-1][1]

    assert out.shape == (B, output_size)
    assert jnp.allclose(out, ref, atol=1e-5, rtol=1e-5)
    print("KERNEL_OK")
</pallas_src>

<mosaic_0001>
module attributes {stable_mosaic.version = 11 : i64} {
  func.func @_fused_mlp_kernel(%arg0: i32, %arg1: memref<8x1024xf32, #tpu.memory_space<vmem>>, %arg2: memref<1024x128xf32, #tpu.memory_space<vmem>>, %arg3: memref<1x128xf32, #tpu.memory_space<vmem>>, %arg4: memref<128x128xf32, #tpu.memory_space<vmem>>, %arg5: memref<1x128xf32, #tpu.memory_space<vmem>>, %arg6: memref<128x128xf32, #tpu.memory_space<vmem>>, %arg7: memref<1x128xf32, #tpu.memory_space<vmem>>, %arg8: memref<128x128xf32, #tpu.memory_space<vmem>>, %arg9: memref<1x128xf32, #tpu.memory_space<vmem>>, %arg10: memref<8x128xf32, #tpu.memory_space<vmem>>) attributes {dimension_semantics = [#tpu.dimension_semantics<parallel>], iteration_bounds = array<i64: 1>, scalar_prefetch = 0 : i64, scratch_operands = 0 : i64, tpu.core_type = #tpu.core_type<tc>, window_params = [{transform_indices = @transform_0, window_bounds = array<i64: 8, 1024>}, {pipeline_mode = #tpu.pipeline_mode<synchronous>, transform_indices = @transform_1, window_bounds = array<i64: 1024, 128>}, {pipeline_mode = #tpu.pipeline_mode<synchronous>, transform_indices = @transform_2, window_bounds = array<i64: 1, 128>}, {pipeline_mode = #tpu.pipeline_mode<synchronous>, transform_indices = @transform_3, window_bounds = array<i64: 128, 128>}, {pipeline_mode = #tpu.pipeline_mode<synchronous>, transform_indices = @transform_4, window_bounds = array<i64: 1, 128>}, {pipeline_mode = #tpu.pipeline_mode<synchronous>, transform_indices = @transform_5, window_bounds = array<i64: 128, 128>}, {pipeline_mode = #tpu.pipeline_mode<synchronous>, transform_indices = @transform_6, window_bounds = array<i64: 1, 128>}, {pipeline_mode = #tpu.pipeline_mode<synchronous>, transform_indices = @transform_7, window_bounds = array<i64: 128, 128>}, {pipeline_mode = #tpu.pipeline_mode<synchronous>, transform_indices = @transform_8, window_bounds = array<i64: 1, 128>}, {transform_indices = @transform_9, window_bounds = array<i64: 8, 128>}]} {
    %c0 = arith.constant 0 : index
    %c0_0 = arith.constant 0 : index
    %0 = vector.load %arg1[%c0, %c0_0] : memref<8x1024xf32, #tpu.memory_space<vmem>>, vector<8x1024xf32>
    %c0_1 = arith.constant 0 : index
    %c0_2 = arith.constant 0 : index
    %1 = vector.load %arg2[%c0_1, %c0_2] : memref<1024x128xf32, #tpu.memory_space<vmem>>, vector<1024x128xf32>
    %c0_3 = arith.constant 0 : index
    %c0_4 = arith.constant 0 : index
    %2 = vector.load %arg3[%c0_3, %c0_4] : memref<1x128xf32, #tpu.memory_space<vmem>>, vector<1x128xf32>
    %cst = arith.constant dense<0.000000e+00> : vector<8x128xf32>
    %3 = tpu.matmul %0, %1, %cst {dimension_numbers = #tpu.dot_dimension_numbers<[1], [0], [0], [1], [0, 0, 1, 1], [], []>} : vector<8x1024xf32>, vector<1024x128xf32>, vector<8x128xf32> -> vector<8x128xf32>
    %4 = vector.broadcast %2 : vector<1x128xf32> to vector<8x128xf32>
    %5 = arith.addf %3, %4 : vector<8x128xf32>
    %cst_5 = arith.constant 0.000000e+00 : f32
    %6 = vector.broadcast %cst_5 : f32 to vector<8x128xf32>
    %7 = arith.maximumf %5, %6 : vector<8x128xf32>
    %c0_6 = arith.constant 0 : index
    %c0_7 = arith.constant 0 : index
    %8 = vector.load %arg4[%c0_6, %c0_7] : memref<128x128xf32, #tpu.memory_space<vmem>>, vector<128x128xf32>
    %c0_8 = arith.constant 0 : index
    %c0_9 = arith.constant 0 : index
    %9 = vector.load %arg5[%c0_8, %c0_9] : memref<1x128xf32, #tpu.memory_space<vmem>>, vector<1x128xf32>
    %cst_10 = arith.constant dense<0.000000e+00> : vector<8x128xf32>
    %10 = tpu.matmul %7, %8, %cst_10 {dimension_numbers = #tpu.dot_dimension_numbers<[1], [0], [0], [1], [0, 0, 1, 1], [], []>} : vector<8x128xf32>, vector<128x128xf32>, vector<8x128xf32> -> vector<8x128xf32>
    %11 = vector.broadcast %9 : vector<1x128xf32> to vector<8x128xf32>
    %12 = arith.addf %10, %11 : vector<8x128xf32>
    %cst_11 = arith.constant 0.000000e+00 : f32
    %13 = vector.broadcast %cst_11 : f32 to vector<8x128xf32>
    %14 = arith.maximumf %12, %13 : vector<8x128xf32>
    %c0_12 = arith.constant 0 : index
    %c0_13 = arith.constant 0 : index
    %15 = vector.load %arg6[%c0_12, %c0_13] : memref<128x128xf32, #tpu.memory_space<vmem>>, vector<128x128xf32>
    %c0_14 = arith.constant 0 : index
    %c0_15 = arith.constant 0 : index
    %16 = vector.load %arg7[%c0_14, %c0_15] : memref<1x128xf32, #tpu.memory_space<vmem>>, vector<1x128xf32>
    %cst_16 = arith.constant dense<0.000000e+00> : vector<8x128xf32>
    %17 = tpu.matmul %14, %15, %cst_16 {dimension_numbers = #tpu.dot_dimension_numbers<[1], [0], [0], [1], [0, 0, 1, 1], [], []>} : vector<8x128xf32>, vector<128x128xf32>, vector<8x128xf32> -> vector<8x128xf32>
    %18 = vector.broadcast %16 : vector<1x128xf32> to vector<8x128xf32>
    %19 = arith.addf %17, %18 : vector<8x128xf32>
    %cst_17 = arith.constant 0.000000e+00 : f32
    %20 = vector.broadcast %cst_17 : f32 to vector<8x128xf32>
    %21 = arith.maximumf %19, %20 : vector<8x128xf32>
    %c0_18 = arith.constant 0 : index
    %c0_19 = arith.constant 0 : index
    %22 = vector.load %arg8[%c0_18, %c0_19] : memref<128x128xf32, #tpu.memory_space<vmem>>, vector<128x128xf32>
    %c0_20 = arith.constant 0 : index
    %c0_21 = arith.constant 0 : index
    %23 = vector.load %arg9[%c0_20, %c0_21] : memref<1x128xf32, #tpu.memory_space<vmem>>, vector<1x128xf32>
    %cst_22 = arith.constant dense<0.000000e+00> : vector<8x128xf32>
    %24 = tpu.matmul %21, %22, %cst_22 {dimension_numbers = #tpu.dot_dimension_numbers<[1], [0], [0], [1], [0, 0, 1, 1], [], []>} : vector<8x128xf32>, vector<128x128xf32>, vector<8x128xf32> -> vector<8x128xf32>
    %25 = vector.broadcast %23 : vector<1x128xf32> to vector<8x128xf32>
    %26 = arith.addf %24, %25 : vector<8x128xf32>
    %c0_23 = arith.constant 0 : index
    %c0_24 = arith.constant 0 : index
    %27 = vector.load %arg10[%c0_23, %c0_24] : memref<8x128xf32, #tpu.memory_space<vmem>>, vector<8x128xf32>
    tpu.vector_store %arg10[%c0_23, %c0_24], %26 {strides = array<i32>} : memref<8x128xf32, #tpu.memory_space<vmem>>, vector<8x128xf32>,
    return
  }
  func.func @transform_0(%arg0: i32) -> (i32, i32) {
    %c0_i32 = arith.constant 0 : i32
    %c0_i32_0 = arith.constant 0 : i32
    return %arg0, %c0_i32 : i32, i32
  }
  func.func @transform_1(%arg0: i32) -> (i32, i32) {
    %c0_i32 = arith.constant 0 : i32
    %c0_i32_0 = arith.constant 0 : i32
    %c0_i32_1 = arith.constant 0 : i32
    return %c0_i32, %c0_i32_0 : i32, i32
  }
  func.func @transform_2(%arg0: i32) -> (i32, i32) {
    %c0_i32 = arith.constant 0 : i32
    %c0_i32_0 = arith.constant 0 : i32
    %c0_i32_1 = arith.constant 0 : i32
    return %c0_i32, %c0_i32_0 : i32, i32
  }
  func.func @transform_3(%arg0: i32) -> (i32, i32) {
    %c0_i32 = arith.constant 0 : i32
    %c0_i32_0 = arith.constant 0 : i32
    %c0_i32_1 = arith.constant 0 : i32
    return %c0_i32, %c0_i32_0 : i32, i32
  }
  func.func @transform_4(%arg0: i32) -> (i32, i32) {
    %c0_i32 = arith.constant 0 : i32
    %c0_i32_0 = arith.constant 0 : i32
    %c0_i32_1 = arith.constant 0 : i32
    return %c0_i32, %c0_i32_0 : i32, i32
  }
  func.func @transform_5(%arg0: i32) -> (i32, i32) {
    %c0_i32 = arith.constant 0 : i32
    %c0_i32_0 = arith.constant 0 : i32
    %c0_i32_1 = arith.constant 0 : i32
    return %c0_i32, %c0_i32_0 : i32, i32
  }
  func.func @transform_6(%arg0: i32) -> (i32, i32) {
    %c0_i32 = arith.constant 0 : i32
    %c0_i32_0 = arith.constant 0 : i32
    %c0_i32_1 = arith.constant 0 : i32
    return %c0_i32, %c0_i32_0 : i32, i32
  }
  func.func @transform_7(%arg0: i32) -> (i32, i32) {
    %c0_i32 = arith.constant 0 : i32
    %c0_i32_0 = arith.constant 0 : i32
    %c0_i32_1 = arith.constant 0 : i32
    return %c0_i32, %c0_i32_0 : i32, i32
  }
  func.func @transform_8(%arg0: i32) -> (i32, i32) {
    %c0_i32 = arith.constant 0 : i32
    %c0_i32_0 = arith.constant 0 : i32
    %c0_i32_1 = arith.constant 0 : i32
    return %c0_i32, %c0_i32_0 : i32, i32
  }
  func.func @transform_9(%arg0: i32) -> (i32, i32) {
    %c0_i32 = arith.constant 0 : i32
    %c0_i32_0 = arith.constant 0 : i32
    return %arg0, %c0_i32 : i32, i32
  }
}

</mosaic_0001>

<bundles_post_ra>
// kernel: tpu_custom_call.1
= control target key start
LH: loop header
LB: loop body
LE: loop exit
PB: predicated region body
PF: predicated region fallthrough
CT: control target
= control target key end

     0   :  { %14 = vsyncpa [#allocation3], 0  ;;  %s1657_s0 = inlined_call_operand.hbm [shape: f32[8,1024], index: 0, kind: input, shape index: {}]   ;;  %s1658_s1 = inlined_call_operand.hbm [shape: f32[1024,128], index: 1, kind: input, shape index: {}]   ;;  %s1659_s2 = inlined_call_operand.vmem [shape: f32[1,128], index: 2, kind: input, shape index: {}]   ;;  %s1660_s3 = inlined_call_operand.hbm [shape: f32[128,128], index: 3, kind: input, shape index: {}]   ;;  %s1661_s4 = inlined_call_operand.vmem [shape: f32[1,128], index: 4, kind: input, shape index: {}]   ;;  %s1662_s5 = inlined_call_operand.hbm [shape: f32[128,128], index: 5, kind: input, shape index: {}]   ;;  %s1663_s6 = inlined_call_operand.vmem [shape: f32[1,128], index: 6, kind: input, shape index: {}]   ;;  %s1664_s7 = inlined_call_operand.hbm [shape: f32[128,128], index: 7, kind: input, shape index: {}]   ;;  %s1665_s8 = inlined_call_operand.vmem [shape: f32[1,128], index: 8, kind: input, shape index: {}]   ;;  %s1666_s9 = inlined_call_operand.hbm [shape: f32[8,128], index: 9, kind: output, shape index: {}]  }
   0x1   :  { %15 = vsyncpa [#allocation6], 0 }
   0x2   :  { %16 = vsyncpa [#allocation9], 0 }
   0x3   :  { %17 = vsyncpa [#allocation4], 0  ;;  %s1473_s30 = smov [#allocation5]   ;;  %s1333_s13 = scalar_lea.hbm %s1658_s1, 16384 }
   0x4   :  { %s33_s10 = sshll.u32 %s1473_s30, 4  ;;  %p1334_p0 = scmp.ne.s32.totalorder %s1658_s1, %s1333_s13  ;;  %s34_s10 = int_to_ptr.vmem [resolvable:$true] %s33_s10 }
   0x5   :  { %p1337_p1 = scmp.lt.u32.totalorder %s1333_s13, %s1658_s1 }
   0x7   :  { %p1339_p2 = pnand %p1337_p1, %p1334_p0 }
   0x9   :  { %1342 = shalt.err (!%p1339_p2)
}
   0xa   :  { %s1343_s18 = scalar_lea.vmem %s34_s10, 16384  ;;  %p1348_p4 = scmp.lt.s32.totalorder %s34_s10, %s34_s10 }
   0xb   :  { %p1344_p3 = scmp.ne.s32.totalorder %s34_s10, %s1343_s18  ;;  %p1349_p5 = scmp.lt.s32.totalorder %s1343_s18, %s1343_s18 }
   0xd   :  { %p1350_p6 = por %p1349_p5, %p1348_p4 }
   0xf   :  { %p1351_p7 = pnand %p1350_p6, %p1344_p3 }
  0x11   :  { %1354 = shalt.err (!%p1351_p7)
}
  0x12   :  { %s1474_s19 = smov 128   ;;  %s1475_s20 = smov 8  }
  0x13   :  { %39 = dma.hbm_to_vmem [thread:$0]  %s1658_s1, 16384, %s34_s10, [#allocation6], %s1474_s19, %s1474_s19, %s1475_s20  }
  0x14   :  { %s1476_s23 = smov [#allocation8]   ;;  %s1477_s25 = smov [#allocation2]  }
  0x15   :  { %s61_s24 = sshll.u32 %s1476_s23, 4  ;;  %s24_s26 = sshll.u32 %s1477_s25, 4  ;;  %s62_s24 = int_to_ptr.vmem [resolvable:$true] %s61_s24  ;;  %s25_s26 = int_to_ptr.vmem [resolvable:$true] %s24_s26 }
  0x16   :  { %s1355_s29 = scalar_lea.hbm %s1662_s5, 2048 }
  0x17   :  { %p1356_p8 = scmp.ne.s32.totalorder %s1662_s5, %s1355_s29  ;;  %p1359_p9 = scmp.lt.u32.totalorder %s1355_s29, %s1662_s5 }
  0x19   :  { %p1361_p10 = pnand %p1359_p9, %p1356_p8 }
  0x1b   :  { %1364 = shalt.err (!%p1361_p10)
}
  0x1c   :  { %s1365_s1 = scalar_lea.vmem %s62_s24, 2048  ;;  %p1370_p12 = scmp.lt.s32.totalorder %s62_s24, %s62_s24 }
  0x1d   :  { %p1366_p11 = scmp.ne.s32.totalorder %s62_s24, %s1365_s1  ;;  %p1371_p13 = scmp.lt.s32.totalorder %s1365_s1, %s1365_s1 }
  0x1f   :  { %p1372_p0 = por %p1371_p13, %p1370_p12 }
  0x21   :  { %p1373_p1 = pnand %p1372_p0, %p1366_p11 }
  0x23   :  { %1376 = shalt.err (!%p1373_p1)
}
  0x24   :  { %67 = dma.hbm_to_vmem [thread:$0]  %s1662_s5, 2048, %s62_s24, [#allocation9], %s1474_s19, %s1474_s19, %s1475_s20  }
  0x25   :  { %s1377_s17 = scalar_lea.hbm %s1657_s0, 1024 }
  0x26   :  { %p1378_p2 = scmp.ne.s32.totalorder %s1657_s0, %s1377_s17  ;;  %p1381_p3 = scmp.lt.u32.totalorder %s1377_s17, %s1657_s0 }
  0x28   :  { %p1383_p4 = pnand %p1381_p3, %p1378_p2 }
  0x2a   :  { %1386 = shalt.err (!%p1383_p4)
}
  0x2b   :  { %s1387_s25 = scalar_lea.vmem %s25_s26, 1024  ;;  %p1392_p6 = scmp.lt.s32.totalorder %s25_s26, %s25_s26 }
  0x2c   :  { %p1388_p5 = scmp.ne.s32.totalorder %s25_s26, %s1387_s25  ;;  %p1393_p7 = scmp.lt.s32.totalorder %s1387_s25, %s1387_s25 }
  0x2e   :  { %p1394_p8 = por %p1393_p7, %p1392_p6 }
  0x30   :  { %p1395_p9 = pnand %p1394_p8, %p1388_p5 }
  0x32   :  { %1398 = shalt.err (!%p1395_p9)
}
  0x33   :  { %27 = dma.hbm_to_vmem [thread:$0]  %s1657_s0, 1024, %s25_s26, [#allocation3]  }
  0x34   :  { %s1478_s27 = smov [#allocation7]   ;;  %s1479_s29 = smov [#allocation10]  }
  0x35   :  { %s47_s28 = sshll.u32 %s1478_s27, 4  ;;  %s75_s30 = sshll.u32 %s1479_s29, 4  ;;  %s48_s28 = int_to_ptr.vmem [resolvable:$true] %s47_s28  ;;  %s76_s30 = int_to_ptr.vmem [resolvable:$true] %s75_s30 }
  0x36   :  { %s1399_s13 = scalar_lea.hbm %s1660_s3, 2048 }
  0x37   :  { %p1400_p10 = scmp.ne.s32.totalorder %s1660_s3, %s1399_s13  ;;  %p1403_p11 = scmp.lt.u32.totalorder %s1399_s13, %s1660_s3 }
  0x39   :  { %p1405_p12 = pnand %p1403_p11, %p1400_p10 }
  0x3b   :  { %1408 = shalt.err (!%p1405_p12)
}
  0x3c   :  { %s1409_s0 = scalar_lea.vmem %s48_s28, 2048  ;;  %p1414_p0 = scmp.lt.s32.totalorder %s48_s28, %s48_s28 }
  0x3d   :  { %p1410_p13 = scmp.ne.s32.totalorder %s48_s28, %s1409_s0  ;;  %p1415_p1 = scmp.lt.s32.totalorder %s1409_s0, %s1409_s0 }
  0x3f   :  { %p1416_p2 = por %p1415_p1, %p1414_p0 }
  0x41   :  { %p1417_p3 = pnand %p1416_p2, %p1410_p13 }
  0x43   :  { %1420 = shalt.err (!%p1417_p3)
}
  0x44   :  { %53 = dma.hbm_to_vmem [thread:$0]  %s1660_s3, 2048, %s48_s28, [#allocation6], %s1474_s19, %s1474_s19, %s1475_s20  }
  0x45   :  { %s1421_s21 = scalar_lea.hbm %s1664_s7, 2048 }
  0x46   :  { %p1422_p4 = scmp.ne.s32.totalorder %s1664_s7, %s1421_s21  ;;  %p1425_p5 = scmp.lt.u32.totalorder %s1421_s21, %s1664_s7 }
  0x48   :  { %p1427_p6 = pnand %p1425_p5, %p1422_p4 }
  0x4a   :  { %1430 = shalt.err (!%p1427_p6)
}
  0x4b   :  { %s1431_s24 = scalar_lea.vmem %s76_s30, 2048  ;;  %p1436_p8 = scmp.lt.s32.totalorder %s76_s30, %s76_s30 }
  0x4c   :  { %p1432_p7 = scmp.ne.s32.totalorder %s76_s30, %s1431_s24  ;;  %p1437_p9 = scmp.lt.s32.totalorder %s1431_s24, %s1431_s24 }
  0x4e   :  { %p1438_p10 = por %p1437_p9, %p1436_p8 }
  0x50   :  { %p1439_p11 = pnand %p1438_p10, %p1432_p7 }
  0x52   :  { %1442 = shalt.err (!%p1439_p11)
}
  0x53   :  { %81 = dma.hbm_to_vmem [thread:$0]  %s1664_s7, 2048, %s76_s30, [#allocation9], %s1474_s19, %s1474_s19, %s1475_s20  }
  0x54   :  { %1465 = dma.done.wait [#allocation3], 1024  }
  0x55   :  { %1466 = vsyncadd [#allocation3], 4294966272 }
  0x56   :  { %1467 = dma.done.wait [#allocation6], 18432  }
  0x57   :  { %1468 = vsyncadd [#allocation6], 4294948864 }
  0x58   :  { %1469 = dma.done.wait [#allocation9], 4096  }
  0x59   :  { %1470 = vsyncadd [#allocation9], 4294963200  ;;  %v123_v0 = vld [vmem:[#allocation5 + $0x80] sm:$0xff]  ;;  %v124_v1 = vld [vmem:[#allocation5 + $0x88] sm:$0xff]  ;;  %vm1481_vm0 = vmmov 0   ;;  %s1483_s11 = smov [#allocation11]  }
  0x5a   :  { %v107_v2 = vld [vmem:[#allocation5] sm:$0xff]  ;;  %v1122_v3 = vpack.c.bf16 %v124_v1, %v123_v0  ;;  %v108_v4 = vld [vmem:[#allocation5 + $0x8] sm:$0xff]  ;;  %v125_v11 = vld [vmem:[#allocation5 + $0x90] sm:$0xff]  ;;  %s811_s12 = sshll.u32 %s1483_s11, 4  ;;  %s812_s12 = int_to_ptr.vmem [resolvable:$true] %s811_s12 }
  0x5b   :  { %v155_v5 = vld [vmem:[#allocation5 + $0x180] sm:$0xff]  ;;  %v156_v6 = vld [vmem:[#allocation5 + $0x188] sm:$0xff]  ;;  %v1124_v7 = vpack.c.bf16 %v108_v4, %v107_v2  ;;  %v126_v13 = vld [vmem:[#allocation5 + $0x98] sm:$0xff]  ;;  %s1443_s13 = scalar_lea.vmem %s812_s12, 128  ;;  %p1448_p13 = scmp.lt.s32.totalorder %s812_s12, %s812_s12 }
  0x5c   :  { %v1154_v8 = vpack.c.bf16 %v156_v6, %v155_v5  ;;  %v139_v9 = vld [vmem:[#allocation5 + $0x100] sm:$0xff]  ;;  %v140_v10 = vld [vmem:[#allocation5 + $0x108] sm:$0xff]  ;;  %1123 = vmatprep.subr.bf16.mxu0 %v1122_v3  ;;  %v109_v14 = vld [vmem:[#allocation5 + $0x10] sm:$0xff]  ;;  %v1126_v16 = vpack.c.bf16 %v126_v13, %v125_v11  ;;  %p1444_p12 = scmp.ne.s32.totalorder %s812_s12, %s1443_s13  ;;  %p1449_p0 = scmp.lt.s32.totalorder %s1443_s13, %s1443_s13 }
  0x5d   :  { %v1156_v12 = vpack.c.bf16 %v140_v10, %v139_v9  ;;  %v110_v15 = vld [vmem:[#allocation5 + $0x18] sm:$0xff]  ;;  %1125 = vmatpush3.bf16.msra.mxu0 %v1124_v7  ;;  %v157_v18 = vld [vmem:[#allocation5 + $0x190] sm:$0xff]  ;;  %v127_v23 = vld [vmem:[#allocation5 + $0xa0] sm:$0xff] }
  0x5e   :  { %1155 = vmatprep.subr.bf16.mxu1 %v1154_v8  ;;  %v1128_v17 = vpack.c.bf16 %v110_v15, %v109_v14  ;;  %v158_v19 = vld [vmem:[#allocation5 + $0x198] sm:$0xff]  ;;  %v141_v20 = vld [vmem:[#allocation5 + $0x110] sm:$0xff]  ;;  %v128_v24 = vld [vmem:[#allocation5 + $0xa8] sm:$0xff]  ;;  %1127 = vmatprep.subr.bf16.mxu0 %v1126_v16  ;;  %p1450_p1 = por %p1449_p0, %p1448_p13 }
  0x5f   :  { %1157 = vmatpush3.bf16.msra.mxu1 %v1156_v12  ;;  %v1158_v21 = vpack.c.bf16 %v158_v19, %v157_v18  ;;  %v142_v22 = vld [vmem:[#allocation5 + $0x118] sm:$0xff]  ;;  %v1130_v26 = vpack.c.bf16 %v128_v24, %v127_v23  ;;  %v111_v27 = vld [vmem:[#allocation5 + $0x20] sm:$0xff]  ;;  %v112_v28 = vld [vmem:[#allocation5 + $0x28] sm:$0xff] }
  0x60   :  { %v1160_v25 = vpack.c.bf16 %v142_v22, %v141_v20  ;;  %v159_v29 = vld [vmem:[#allocation5 + $0x1a0] sm:$0xff]  ;;  %v160_v30 = vld [vmem:[#allocation5 + $0x1a8] sm:$0xff]  ;;  %v1132_v33 = vpack.c.bf16 %v112_v28, %v111_v27  ;;  %v129_v35 = vld [vmem:[#allocation5 + $0xb0] sm:$0xff]  ;;  %p1451_p2 = pnand %p1450_p1, %p1444_p12 }
  0x61   :  { %1159 = vmatprep.subr.bf16.mxu1 %v1158_v21  ;;  %v143_v31 = vld [vmem:[#allocation5 + $0x120] sm:$0xff]  ;;  %v144_v32 = vld [vmem:[#allocation5 + $0x128] sm:$0xff]  ;;  %1129 = vmatpush3.bf16.msra.mxu0 %v1128_v17  ;;  %v1162_v34 = vpack.c.bf16 %v160_v30, %v159_v29  ;;  %v130_v36 = vld [vmem:[#allocation5 + $0xb8] sm:$0xff] }
  0x62   :  { %v113_v37 = vld [vmem:[#allocation5 + $0x30] sm:$0xff]  ;;  %1131 = vmatprep.subr.bf16.mxu0 %v1130_v26  ;;  %v1164_v38 = vpack.c.bf16 %v144_v32, %v143_v31  ;;  %v1134_v39 = vpack.c.bf16 %v130_v36, %v129_v35  ;;  %v114_v40 = vld [vmem:[#allocation5 + $0x38] sm:$0xff]  ;;  %v131_v46 = vld [vmem:[#allocation5 + $0xc0] sm:$0xff] }
  0x63   :  { %1161 = vmatpush3.bf16.msra.mxu1 %v1160_v25  ;;  %v161_v41 = vld [vmem:[#allocation5 + $0x1b0] sm:$0xff]  ;;  %v162_v42 = vld [vmem:[#allocation5 + $0x1b8] sm:$0xff]  ;;  %v132_v47 = vld [vmem:[#allocation5 + $0xc8] sm:$0xff]  ;;  %v1136_v48 = vpack.c.bf16 %v114_v40, %v113_v37 }
  0x64   :  { %1163 = vmatprep.subr.bf16.mxu1 %v1162_v34  ;;  %v1166_v43 = vpack.c.bf16 %v162_v42, %v161_v41  ;;  %v145_v44 = vld [vmem:[#allocation5 + $0x130] sm:$0xff]  ;;  %v146_v45 = vld [vmem:[#allocation5 + $0x138] sm:$0xff]  ;;  %v163_v49 = vld [vmem:[#allocation5 + $0x1c0] sm:$0xff]  ;;  %v1138_v52 = vpack.c.bf16 %v132_v47, %v131_v46 }
  0x65   :  { %1133 = vmatpush3.bf16.msra.mxu0 %v1132_v33  ;;  %v164_v50 = vld [vmem:[#allocation5 + $0x1c8] sm:$0xff]  ;;  %v1168_v51 = vpack.c.bf16 %v146_v45, %v145_v44  ;;  %v115_v53 = vld [vmem:[#allocation5 + $0x40] sm:$0xff]  ;;  %v133_v58 = vld [vmem:[#allocation5 + $0xd0] sm:$0xff] }
  0x66   :  { %1135 = vmatprep.subr.bf16.mxu0 %v1134_v39  ;;  %v116_v54 = vld [vmem:[#allocation5 + $0x48] sm:$0xff]  ;;  %v147_v55 = vld [vmem:[#allocation5 + $0x140] sm:$0xff]  ;;  %v1170_v56 = vpack.c.bf16 %v164_v50, %v163_v49  ;;  %v134_v59 = vld [vmem:[#allocation5 + $0xd8] sm:$0xff] }
  0x67   :  { %1165 = vmatpush3.bf16.msra.mxu1 %v1164_v38  ;;  %v148_v57 = vld [vmem:[#allocation5 + $0x148] sm:$0xff]  ;;  %v165_v60 = vld [vmem:[#allocation5 + $0x1d0] sm:$0xff]  ;;  %v166_v61 = vld [vmem:[#allocation5 + $0x1d8] sm:$0xff]  ;;  %v1140_v62 = vpack.c.bf16 %v116_v54, %v115_v53  ;;  %v1142_v0 = vpack.c.bf16 %v134_v59, %v133_v58 }
  0x68   :  { %1167 = vmatprep.subr.bf16.mxu1 %v1166_v43  ;;  %v1172_v63 = vpack.c.bf16 %v148_v57, %v147_v55  ;;  %v117_v1 = vld [vmem:[#allocation5 + $0x50] sm:$0xff]  ;;  %v118_v2 = vld [vmem:[#allocation5 + $0x58] sm:$0xff]  ;;  %v1174_v4 = vpack.c.bf16 %v166_v61, %v165_v60  ;;  %v135_v6 = vld [vmem:[#allocation5 + $0xe0] sm:$0xff] }
  0x69   :  { %1137 = vmatpush3.bf16.msra.mxu0 %v1136_v48  ;;  %v149_v3 = vld [vmem:[#allocation5 + $0x150] sm:$0xff]  ;;  %v150_v5 = vld [vmem:[#allocation5 + $0x158] sm:$0xff]  ;;  %v136_v7 = vld [vmem:[#allocation5 + $0xe8] sm:$0xff]  ;;  %v1144_v10 = vpack.c.bf16 %v118_v2, %v117_v1 }
  0x6a   :  { %1139 = vmatprep.subr.bf16.mxu0 %v1138_v52  ;;  %v167_v8 = vld [vmem:[#allocation5 + $0x1e0] sm:$0xff]  ;;  %v168_v9 = vld [vmem:[#allocation5 + $0x1e8] sm:$0xff]  ;;  %v1176_v13 = vpack.c.bf16 %v150_v5, %v149_v3  ;;  %v1146_v14 = vpack.c.bf16 %v136_v7, %v135_v6  ;;  %v137_v19 = vld [vmem:[#allocation5 + $0xf0] sm:$0xff] }
  0x6b   :  { %1169 = vmatpush3.bf16.msra.mxu1 %v1168_v51  ;;  %v119_v11 = vld [vmem:[#allocation5 + $0x60] sm:$0xff]  ;;  %v120_v12 = vld [vmem:[#allocation5 + $0x68] sm:$0xff]  ;;  %v1178_v18 = vpack.c.bf16 %v168_v9, %v167_v8  ;;  %v138_v20 = vld [vmem:[#allocation5 + $0xf8] sm:$0xff] }
  0x6c   :  { %1171 = vmatprep.subr.bf16.mxu1 %v1170_v56  ;;  %v151_v15 = vld [vmem:[#allocation5 + $0x160] sm:$0xff]  ;;  %v152_v16 = vld [vmem:[#allocation5 + $0x168] sm:$0xff]  ;;  %v102_v21 = vld [vmem:[#allocation2 + $0x18] sm:$0xff]  ;;  %v1148_v24 = vpack.c.bf16 %v120_v12, %v119_v11  ;;  %v1150_v26 = vpack.c.bf16 %v138_v20, %v137_v19 }
  0x6d   :  { %1141 = vmatpush3.bf16.msra.mxu0 %v1140_v62  ;;  %v100_v17 = vld [vmem:[#allocation2 + $0x8] sm:$0xff]  ;;  %v169_v22 = vld [vmem:[#allocation5 + $0x1f0] sm:$0xff]  ;;  %v170_v23 = vld [vmem:[#allocation5 + $0x1f8] sm:$0xff]  ;;  %376 = vmatprep.mubr.f32.mxu1 %v102_v21  ;;  %v1180_v25 = vpack.c.bf16 %v152_v16, %v151_v15 }
  0x6e   :  { %1143 = vmatprep.subr.bf16.mxu0 %v1142_v0  ;;  %306 = vmatprep.mubr.f32.mxu0 %v100_v17  ;;  %v121_v27 = vld [vmem:[#allocation5 + $0x70] sm:$0xff]  ;;  %v122_v28 = vld [vmem:[#allocation5 + $0x78] sm:$0xff]  ;;  %v1182_v30 = vpack.c.bf16 %v170_v23, %v169_v22  ;;  %v187_v32 = vld [vmem:[#allocation5 + $0x280] sm:$0xff] }
  0x6f   :  { %1173 = vmatpush3.bf16.msra.mxu1 %v1172_v63  ;;  %v153_v29 = vld [vmem:[#allocation5 + $0x170] sm:$0xff]  ;;  %v154_v31 = vld [vmem:[#allocation5 + $0x178] sm:$0xff]  ;;  %v188_v33 = vld [vmem:[#allocation5 + $0x288] sm:$0xff]  ;;  %v1152_v36 = vpack.c.bf16 %v122_v28, %v121_v27 }
  0x70   :  { %1175 = vmatprep.subr.bf16.mxu1 %v1174_v4  ;;  %v219_v34 = vld [vmem:[#allocation5 + $0x380] sm:$0xff]  ;;  %v220_v35 = vld [vmem:[#allocation5 + $0x388] sm:$0xff]  ;;  %v1184_v37 = vpack.c.bf16 %v154_v31, %v153_v29  ;;  %v1186_v38 = vpack.c.bf16 %v188_v33, %v187_v32  ;;  %v189_v44 = vld [vmem:[#allocation5 + $0x290] sm:$0xff] }
  0x71   :  { %1145 = vmatpush3.bf16.msra.mxu0 %v1144_v10  ;;  %v171_v39 = vld [vmem:[#allocation5 + $0x200] sm:$0xff]  ;;  %v172_v40 = vld [vmem:[#allocation5 + $0x208] sm:$0xff]  ;;  %v1218_v42 = vpack.c.bf16 %v220_v35, %v219_v34  ;;  %v190_v45 = vld [vmem:[#allocation5 + $0x298] sm:$0xff] }
  0x72   :  { %1147 = vmatprep.subr.bf16.mxu0 %v1146_v14  ;;  %v203_v41 = vld [vmem:[#allocation5 + $0x300] sm:$0xff]  ;;  %v204_v43 = vld [vmem:[#allocation5 + $0x308] sm:$0xff]  ;;  %v221_v46 = vld [vmem:[#allocation5 + $0x390] sm:$0xff]  ;;  %v1188_v49 = vpack.c.bf16 %v172_v40, %v171_v39  ;;  %v1190_v52 = vpack.c.bf16 %v190_v45, %v189_v44 }
  0x73   :  { %1177 = vmatpush3.bf16.msra.mxu1 %v1176_v13  ;;  %v222_v47 = vld [vmem:[#allocation5 + $0x398] sm:$0xff]  ;;  %v99_v48 = vld [vmem:[#allocation2] sm:$0xff]  ;;  %v101_v50 = vld [vmem:[#allocation2 + $0x10] sm:$0xff]  ;;  %v1220_v51 = vpack.c.bf16 %v204_v43, %v203_v41 }
  0x74   :  { %1179 = vmatprep.subr.bf16.mxu1 %v1178_v18  ;;  %v173_v53 = vld [vmem:[#allocation5 + $0x210] sm:$0xff]  ;;  %v174_v54 = vld [vmem:[#allocation5 + $0x218] sm:$0xff]  ;;  %v1222_v56 = vpack.c.bf16 %v222_v47, %v221_v46  ;;  %v191_v58 = vld [vmem:[#allocation5 + $0x2a0] sm:$0xff] }
  0x75   :  { %1149 = vmatpush3.bf16.msra.mxu0 %v1148_v24  ;;  %v205_v55 = vld [vmem:[#allocation5 + $0x310] sm:$0xff]  ;;  %v206_v57 = vld [vmem:[#allocation5 + $0x318] sm:$0xff]  ;;  %v192_v59 = vld [vmem:[#allocation5 + $0x2a8] sm:$0xff]  ;;  %v1192_v62 = vpack.c.bf16 %v174_v54, %v173_v53 }
  0x76   :  { %1151 = vmatprep.subr.bf16.mxu0 %v1150_v26  ;;  %v223_v60 = vld [vmem:[#allocation5 + $0x3a0] sm:$0xff]  ;;  %v224_v61 = vld [vmem:[#allocation5 + $0x3a8] sm:$0xff]  ;;  %v1224_v63 = vpack.c.bf16 %v206_v57, %v205_v55  ;;  %v1194_v0 = vpack.c.bf16 %v192_v59, %v191_v58  ;;  %v193_v6 = vld [vmem:[#allocation5 + $0x2b0] sm:$0xff] }
  0x77   :  { %1181 = vmatpush3.bf16.msra.mxu1 %v1180_v25  ;;  %v175_v1 = vld [vmem:[#allocation5 + $0x220] sm:$0xff]  ;;  %v176_v2 = vld [vmem:[#allocation5 + $0x228] sm:$0xff]  ;;  %v1226_v4 = vpack.c.bf16 %v224_v61, %v223_v60  ;;  %v194_v7 = vld [vmem:[#allocation5 + $0x2b8] sm:$0xff] }
  0x78   :  { %1183 = vmatprep.subr.bf16.mxu1 %v1182_v30  ;;  %v207_v3 = vld [vmem:[#allocation5 + $0x320] sm:$0xff]  ;;  %v208_v5 = vld [vmem:[#allocation5 + $0x328] sm:$0xff]  ;;  %v225_v8 = vld [vmem:[#allocation5 + $0x3b0] sm:$0xff]  ;;  %v1196_v10 = vpack.c.bf16 %v176_v2, %v175_v1  ;;  %v1198_v12 = vpack.c.bf16 %v194_v7, %v193_v6 }
  0x79   :  { %1153 = vmatpush3.bf16.msra.mxu0 %v1152_v36  ;;  %v226_v9 = vld [vmem:[#allocation5 + $0x3b8] sm:$0xff]  ;;  %v1228_v11 = vpack.c.bf16 %v208_v5, %v207_v3  ;;  %v177_v13 = vld [vmem:[#allocation5 + $0x230] sm:$0xff]  ;;  %v195_v18 = vld [vmem:[#allocation5 + $0x2c0] sm:$0xff] }
  0x7a   :  { %1187 = vmatprep.subr.bf16.mxu0 %v1186_v38  ;;  %v178_v14 = vld [vmem:[#allocation5 + $0x238] sm:$0xff]  ;;  %v209_v15 = vld [vmem:[#allocation5 + $0x330] sm:$0xff]  ;;  %v1230_v16 = vpack.c.bf16 %v226_v9, %v225_v8  ;;  %v196_v19 = vld [vmem:[#allocation5 + $0x2c8] sm:$0xff] }
  0x7b   :  { %1185 = vmatpush3.bf16.msra.mxu1 %v1184_v37  ;;  %v210_v17 = vld [vmem:[#allocation5 + $0x338] sm:$0xff]  ;;  %v227_v20 = vld [vmem:[#allocation5 + $0x3c0] sm:$0xff]  ;;  %v228_v21 = vld [vmem:[#allocation5 + $0x3c8] sm:$0xff]  ;;  %v1200_v22 = vpack.c.bf16 %v178_v14, %v177_v13  ;;  %v1202_v26 = vpack.c.bf16 %v196_v19, %v195_v18 }
  0x7c   :  { %1219 = vmatprep.subr.bf16.mxu1 %v1218_v42  ;;  %307 = vmatmul.mubr.f32.vlgmr.msra.gmra.mrb[0].mxu0 %v99_v48  ;;  %v104_v23 = vld [vmem:[#allocation2 + $0x28] sm:$0xff]  ;;  %v106_v24 = vld [vmem:[#allocation2 + $0x38] sm:$0xff]  ;;  %v1232_v25 = vpack.c.bf16 %v210_v17, %v209_v15  ;;  %v179_v27 = vld [vmem:[#allocation5 + $0x240] sm:$0xff]  ;;  %v1234_v30 = vpack.c.bf16 %v228_v21, %v227_v20 }
  0x7d   :  { %1189 = vmatpush3.bf16.msra.mxu0 %v1188_v49  ;;  %v180_v28 = vld [vmem:[#allocation5 + $0x248] sm:$0xff]  ;;  %v211_v29 = vld [vmem:[#allocation5 + $0x340] sm:$0xff]  ;;  %v197_v32 = vld [vmem:[#allocation5 + $0x2d0] sm:$0xff]  ;;  %446 = vmatprep.mubr.f32.mxu0 %v104_v23 }
  0x7e   :  { %377 = vmatmul.mubr.f32.vlgmr.msra.gmra.mrb[0].mxu1 %v101_v50  ;;  %1191 = vmatprep.subr.bf16.mxu0 %v1190_v52  ;;  %v212_v31 = vld [vmem:[#allocation5 + $0x348] sm:$0xff]  ;;  %v198_v33 = vld [vmem:[#allocation5 + $0x2d8] sm:$0xff]  ;;  %v229_v34 = vld [vmem:[#allocation5 + $0x3d0] sm:$0xff]  ;;  %v1204_v36 = vpack.c.bf16 %v180_v28, %v179_v27 }
  0x7f   :  { %1221 = vmatpush3.bf16.msra.mxu1 %v1220_v51  ;;  %v230_v35 = vld [vmem:[#allocation5 + $0x3d8] sm:$0xff]  ;;  %516 = vmatprep.mubr.f32.mxu1 %v106_v24  ;;  %v1236_v37 = vpack.c.bf16 %v212_v31, %v211_v29  ;;  %v1206_v38 = vpack.c.bf16 %v198_v33, %v197_v32  ;;  %v181_v39 = vld [vmem:[#allocation5 + $0x250] sm:$0xff]  ;;  %v199_v44 = vld [vmem:[#allocation5 + $0x2e0] sm:$0xff]  ;;  %v1482_v33 = vmov 0.0  }
  0x80   :  { %1223 = vmatprep.subr.bf16.mxu1 %v1222_v56  ;;  %v182_v40 = vld [vmem:[#allocation5 + $0x258] sm:$0xff]  ;;  %v213_v41 = vld [vmem:[#allocation5 + $0x350] sm:$0xff]  ;;  %v1238_v42 = vpack.c.bf16 %v230_v35, %v229_v34  ;;  %v200_v45 = vld [vmem:[#allocation5 + $0x2e8] sm:$0xff] }
  0x81   :  { %1193 = vmatpush3.bf16.msra.mxu0 %v1192_v62  ;;  %v214_v43 = vld [vmem:[#allocation5 + $0x358] sm:$0xff]  ;;  %v231_v46 = vld [vmem:[#allocation5 + $0x3e0] sm:$0xff]  ;;  %v232_v47 = vld [vmem:[#allocation5 + $0x3e8] sm:$0xff]  ;;  %v1208_v48 = vpack.c.bf16 %v182_v40, %v181_v39  ;;  %v1210_v50 = vpack.c.bf16 %v200_v45, %v199_v44 }
  0x82   :  { %1195 = vmatprep.subr.bf16.mxu0 %v1194_v0  ;;  %v1240_v49 = vpack.c.bf16 %v214_v43, %v213_v41  ;;  %v183_v51 = vld [vmem:[#allocation5 + $0x260] sm:$0xff]  ;;  %v184_v52 = vld [vmem:[#allocation5 + $0x268] sm:$0xff]  ;;  %v1242_v54 = vpack.c.bf16 %v232_v47, %v231_v46  ;;  %v201_v56 = vld [vmem:[#allocation5 + $0x2f0] sm:$0xff] }
  0x83   :  { %1225 = vmatpush3.bf16.msra.mxu1 %v1224_v63  ;;  %v215_v53 = vld [vmem:[#allocation5 + $0x360] sm:$0xff]  ;;  %v216_v55 = vld [vmem:[#allocation5 + $0x368] sm:$0xff]  ;;  %v202_v57 = vld [vmem:[#allocation5 + $0x2f8] sm:$0xff]  ;;  %v1212_v60 = vpack.c.bf16 %v184_v52, %v183_v51 }
  0x84   :  { %1227 = vmatprep.subr.bf16.mxu1 %v1226_v4  ;;  %v233_v58 = vld [vmem:[#allocation5 + $0x3f0] sm:$0xff]  ;;  %v234_v59 = vld [vmem:[#allocation5 + $0x3f8] sm:$0xff]  ;;  %v1244_v61 = vpack.c.bf16 %v216_v55, %v215_v53  ;;  %v1214_v62 = vpack.c.bf16 %v202_v57, %v201_v56  ;;  %v103_v6 = vld [vmem:[#allocation2 + $0x20] sm:$0xff] }
  0x85   :  { %1197 = vmatpush3.bf16.msra.mxu0 %v1196_v10  ;;  %v185_v63 = vld [vmem:[#allocation5 + $0x270] sm:$0xff]  ;;  %v186_v0 = vld [vmem:[#allocation5 + $0x278] sm:$0xff]  ;;  %v1246_v1 = vpack.c.bf16 %v234_v59, %v233_v58  ;;  %v523_v8 = vld [vmem:[#allocation7] sm:$0xff] }
  0x86   :  { %1199 = vmatprep.subr.bf16.mxu0 %v1198_v12  ;;  %v217_v2 = vld [vmem:[#allocation5 + $0x370] sm:$0xff]  ;;  %v218_v3 = vld [vmem:[#allocation5 + $0x378] sm:$0xff]  ;;  %v1216_v4 = vpack.c.bf16 %v186_v0, %v185_v63  ;;  %v524_v9 = vld [vmem:[#allocation7 + $0x8] sm:$0xff] }
  0x87   :  { %1229 = vmatpush3.bf16.msra.mxu1 %v1228_v11  ;;  %v1248_v5 = vpack.c.bf16 %v218_v3, %v217_v2  ;;  %v105_v7 = vld [vmem:[#allocation2 + $0x30] sm:$0xff]  ;;  %v1480_v11 = vmov 0.0|0.0   ;;  %v1251_v12 = vpack.c.bf16 %v524_v9, %v523_v8  ;;  %v526_v13 = vld [vmem:[#allocation7 + $0x18] sm:$0xff]  ;;  %v527_v15 = vld [vmem:[#allocation7 + $0x20] sm:$0xff] }
  0x88   :  { %1231 = vmatprep.subr.bf16.mxu1 %v1230_v16  ;;  %v525_v10 = vld [vmem:[#allocation7 + $0x10] sm:$0xff]  ;;  %v528_v16 = vld [vmem:[#allocation7 + $0x28] sm:$0xff]  ;;  %v530_v19 = vld [vmem:[#allocation7 + $0x38] sm:$0xff] }
  0x89   :  { %1201 = vmatpush3.bf16.msra.mxu0 %v1200_v22  ;;  %v1254_v14 = vpack.c.bf16 %v526_v13, %v525_v10  ;;  %v1257_v17 = vpack.c.bf16 %v528_v16, %v527_v15  ;;  %v529_v18 = vld [vmem:[#allocation7 + $0x30] sm:$0xff]  ;;  %v531_v21 = vld [vmem:[#allocation7 + $0x40] sm:$0xff]  ;;  %v532_v22 = vld [vmem:[#allocation7 + $0x48] sm:$0xff] }
  0x8a   :  { %1203 = vmatprep.subr.bf16.mxu0 %v1202_v26  ;;  %v1260_v20 = vpack.c.bf16 %v530_v19, %v529_v18  ;;  %v1263_v23 = vpack.c.bf16 %v532_v22, %v531_v21  ;;  %v533_v24 = vld [vmem:[#allocation7 + $0x50] sm:$0xff]  ;;  %v535_v27 = vld [vmem:[#allocation7 + $0x60] sm:$0xff]  ;;  %v536_v28 = vld [vmem:[#allocation7 + $0x68] sm:$0xff] }
  0x8b   :  { %1233 = vmatpush3.bf16.msra.mxu1 %v1232_v25  ;;  %v534_v25 = vld [vmem:[#allocation7 + $0x58] sm:$0xff]  ;;  %v1269_v29 = vpack.c.bf16 %v536_v28, %v535_v27  ;;  %v617_v34 = vld [vmem:[#allocation8] sm:$0xff]  ;;  %v618_v35 = vld [vmem:[#allocation8 + $0x8] sm:$0xff] }
  0x8c   :  { %1235 = vmatprep.subr.bf16.mxu1 %v1234_v30  ;;  %v1266_v26 = vpack.c.bf16 %v534_v25, %v533_v24  ;;  %v537_v30 = vld [vmem:[#allocation7 + $0x70] sm:$0xff]  ;;  %v538_v31 = vld [vmem:[#allocation7 + $0x78] sm:$0xff]  ;;  %v621_v40 = vld [vmem:[#allocation8 + $0x20] sm:$0xff] }
  0x8d   :  { %1205 = vmatpush3.bf16.msra.mxu0 %v1204_v36  ;;  %v1272_v32 = vpack.c.bf16 %v538_v31, %v537_v30  ;;  %v619_v36 = vld [vmem:[#allocation8 + $0x10] sm:$0xff]  ;;  %v622_v41 = vld [vmem:[#allocation8 + $0x28] sm:$0xff]  ;;  %v624_v44 = vld [vmem:[#allocation8 + $0x38] sm:$0xff] }
  0x8e   :  { %1207 = vmatprep.subr.bf16.mxu0 %v1206_v38  ;;  %v620_v38 = vld [vmem:[#allocation8 + $0x18] sm:$0xff]  ;;  %v623_v43 = vld [vmem:[#allocation8 + $0x30] sm:$0xff]  ;;  %v625_v46 = vld [vmem:[#allocation8 + $0x40] sm:$0xff] }
  0x8f   :  { %1237 = vmatpush3.bf16.msra.mxu1 %v1236_v37  ;;  %v1275_v37 = vpack.c.bf16 %v618_v35, %v617_v34  ;;  %v1278_v39 = vpack.c.bf16 %v620_v38, %v619_v36  ;;  %v1284_v45 = vpack.c.bf16 %v624_v44, %v623_v43  ;;  %v626_v47 = vld [vmem:[#allocation8 + $0x48] sm:$0xff]  ;;  %v629_v52 = vld [vmem:[#allocation8 + $0x60] sm:$0xff]  ;;  %v631_v9 = vld [vmem:[#allocation8 + $0x70] sm:$0xff] }
  0x90   :  { %1239 = vmatprep.subr.bf16.mxu1 %v1238_v42  ;;  %v1281_v42 = vpack.c.bf16 %v622_v41, %v621_v40  ;;  %v630_v53 = vld [vmem:[#allocation8 + $0x68] sm:$0xff]  ;;  %v822_v56 = vld [vmem:[%s1659_s2] ss:$0 sm:$0xff]  ;;  %v632_v10 = vld [vmem:[#allocation8 + $0x78] sm:$0xff] }
  0x91   :  { %1209 = vmatpush3.bf16.msra.mxu0 %v1208_v48  ;;  %v1287_v48 = vpack.c.bf16 %v626_v47, %v625_v46  ;;  %v711_v13 = vld [vmem:[#allocation10] sm:$0xff]  ;;  %v713_v15 = vld [vmem:[#allocation10 + $0x10] sm:$0xff]  ;;  %v726_v40 = vld [vmem:[#allocation10 + $0x78] sm:$0xff] }
  0x92   :  { %1211 = vmatprep.subr.bf16.mxu0 %v1210_v50  ;;  %v628_v50 = vld [vmem:[#allocation8 + $0x58] sm:$0xff]  ;;  %v715_v19 = vld [vmem:[#allocation10 + $0x20] sm:$0xff]  ;;  %v717_v22 = vld [vmem:[#allocation10 + $0x30] sm:$0xff] }
  0x93   :  { %1241 = vmatpush3.bf16.msra.mxu1 %v1240_v49  ;;  %v627_v49 = vld [vmem:[#allocation8 + $0x50] sm:$0xff]  ;;  %v719_v25 = vld [vmem:[#allocation10 + $0x40] sm:$0xff] }
  0x94   :  { %1243 = vmatprep.subr.bf16.mxu1 %v1242_v54  ;;  %v1290_v51 = vpack.c.bf16 %v628_v50, %v627_v49  ;;  %v1293_v54 = vpack.c.bf16 %v630_v53, %v629_v52  ;;  %v721_v28 = vld [vmem:[#allocation10 + $0x50] sm:$0xff]  ;;  %v723_v31 = vld [vmem:[#allocation10 + $0x60] sm:$0xff] }
  0x95   :  { %1213 = vmatpush3.bf16.msra.mxu0 %v1212_v60  ;;  %v823_v34 = vld [vmem:[%s1661_s4] ss:$0 sm:$0xff] }
  0x96   :  { %1215 = vmatprep.subr.bf16.mxu0 %v1214_v62  ;;  %v825_v46 = vld [vmem:[%s1665_s8] ss:$0 sm:$0xff] }
  0x97   :  { %1245 = vmatpush3.bf16.msra.mxu1 %v1244_v61 }
  0x98   :  { %1247 = vmatprep.subr.bf16.mxu1 %v1246_v1 }
  0x99   :  { %1217 = vmatpush3.bf16.msra.mxu0 %v1216_v4 }
  0x9a   :  { %1250 = vmatprep.subr.bf16.mxu0 %v1480_v11 }
  0x9b   :  { %1249 = vmatpush3.bf16.msra.mxu1 %v1248_v5 }
  0x9c   :  { %447 = vmatmul.mubr.f32.vlgmr.msra.gmra.mrb[2].mxu0 %v103_v6  ;;  %1274 = vmatprep.subr.bf16.mxu1 %v1480_v11 }
  0x9d   :  { %1252 = vmatpush3.bf16.msra.mxu0 %v1251_v12  ;;  %1049 = vmatprep.mubr.msk.f32.mxu0 %vm1481_vm0, %v1482_v33  ;;  %v1296_v12 = vpack.c.bf16 %v632_v10, %v631_v9 }
  0x9e   :  { %517 = vmatmul.mubr.f32.vlgmr.msra.gmra.mrb[2].mxu1 %v105_v7  ;;  %1253 = vmatprep.subr.bf16.mxu0 %v1480_v11 }
  0x9f   :  { %1084 = vmatprep.mubr.msk.f32.mxu1 %vm1481_vm0, %v1482_v33  ;;  %1276 = vmatpush3.bf16.msra.mxu1 %v1275_v37 }
  0xa0   :  { %1277 = vmatprep.subr.bf16.mxu1 %v1480_v11 }
  0xa1   :  { %1255 = vmatpush3.bf16.msra.mxu0 %v1254_v14  ;;  %v712_v14 = vld [vmem:[#allocation10 + $0x8] sm:$0xff] }
  0xa2   :  { %1256 = vmatprep.subr.bf16.mxu0 %v1480_v11  ;;  %v1299_v16 = vpack.c.bf16 %v712_v14, %v711_v13 }
  0xa3   :  { %1279 = vmatpush3.bf16.msra.mxu1 %v1278_v39  ;;  %v725_v39 = vld [vmem:[#allocation10 + $0x70] sm:$0xff] }
  0xa4   :  { %1280 = vmatprep.subr.bf16.mxu1 %v1480_v11  ;;  %v1320_v41 = vpack.c.bf16 %v726_v40, %v725_v39 }
  0xa5   :  { %1258 = vmatpush3.bf16.msra.mxu0 %v1257_v17  ;;  %v714_v17 = vld [vmem:[#allocation10 + $0x18] sm:$0xff] }
  0xa6   :  { %1259 = vmatprep.subr.bf16.mxu0 %v1480_v11  ;;  %v1302_v18 = vpack.c.bf16 %v714_v17, %v713_v15 }
  0xa7   :  { %1282 = vmatpush3.bf16.msra.mxu1 %v1281_v42  ;;  %v824_v42 = vld [vmem:[%s1663_s6] ss:$0 sm:$0xff] }
  0xa8   :  { %1283 = vmatprep.subr.bf16.mxu1 %v1480_v11 }
  0xa9   :  { %1261 = vmatpush3.bf16.msra.mxu0 %v1260_v20  ;;  %v716_v20 = vld [vmem:[#allocation10 + $0x28] sm:$0xff] }
  0xaa   :  { %1262 = vmatprep.subr.bf16.mxu0 %v1480_v11  ;;  %v1305_v21 = vpack.c.bf16 %v716_v20, %v715_v19 }
  0xab   :  { %1285 = vmatpush3.bf16.msra.mxu1 %v1284_v45 }
  0xac   :  { %1286 = vmatprep.subr.bf16.mxu1 %v1480_v11 }
  0xad   :  { %1264 = vmatpush3.bf16.msra.mxu0 %v1263_v23  ;;  %v718_v23 = vld [vmem:[#allocation10 + $0x38] sm:$0xff] }
  0xae   :  { %1265 = vmatprep.subr.bf16.mxu0 %v1480_v11  ;;  %v1308_v24 = vpack.c.bf16 %v718_v23, %v717_v22 }
  0xaf   :  { %1288 = vmatpush3.bf16.msra.mxu1 %v1287_v48 }
  0xb0   :  { %1289 = vmatprep.subr.bf16.mxu1 %v1480_v11 }
  0xb1   :  { %1267 = vmatpush3.bf16.msra.mxu0 %v1266_v26  ;;  %v720_v26 = vld [vmem:[#allocation10 + $0x48] sm:$0xff] }
  0xb2   :  { %1268 = vmatprep.subr.bf16.mxu0 %v1480_v11  ;;  %v1311_v27 = vpack.c.bf16 %v720_v26, %v719_v25 }
  0xb3   :  { %1291 = vmatpush3.bf16.msra.mxu1 %v1290_v51 }
  0xb4   :  { %1292 = vmatprep.subr.bf16.mxu1 %v1480_v11 }
  0xb5   :  { %1270 = vmatpush3.bf16.msra.mxu0 %v1269_v29  ;;  %v722_v29 = vld [vmem:[#allocation10 + $0x58] sm:$0xff] }
  0xb6   :  { %1271 = vmatprep.subr.bf16.mxu0 %v1480_v11  ;;  %v1314_v30 = vpack.c.bf16 %v722_v29, %v721_v28 }
  0xb7   :  { %1294 = vmatpush3.bf16.msra.mxu1 %v1293_v54 }
  0xb8   :  { %1295 = vmatprep.subr.bf16.mxu1 %v1480_v11 }
  0xb9   :  { %1273 = vmatpush3.bf16.msra.mxu0 %v1272_v32  ;;  %v724_v32 = vld [vmem:[#allocation10 + $0x68] sm:$0xff] }
  0xba   :  { %1298 = vmatprep.subr.bf16.mxu0 %v1480_v11 }
  0xbb   :  { %1297 = vmatpush3.bf16.msra.mxu1 %v1296_v12 }
 0x14f   :  { %v858_v55 = vpop.f32.mrb[0].mxu0 }
 0x150   :  { %v859_v57 = vpop.f32.mrb[1].mxu0 }
 0x151   :  { %v893_v58 = vpop.f32.mrb[0].mxu1  ;;  %v860_v59 = vadd.f32 %v859_v57, %v858_v55 }
 0x152   :  { %v894_v60 = vpop.f32.mrb[1].mxu1 }
 0x153   :  { %v895_v61 = vadd.f32 %v894_v60, %v893_v58  ;;  %v309_v62 = vadd.f32 %v860_v59, %v822_v56 }
 0x155   :  { %v379_v63 = vadd.f32 %v895_v61, %v309_v62 }
 0x16f   :  { %v928_v0 = vpop.f32.mrb[2].mxu0 }
 0x170   :  { %v929_v1 = vpop.f32.mrb[3].mxu0 }
 0x171   :  { %v963_v2 = vpop.f32.mrb[2].mxu1  ;;  %v930_v3 = vadd.f32 %v929_v1, %v928_v0 }
 0x172   :  { %v964_v4 = vpop.f32.mrb[3].mxu1 }
 0x173   :  { %v965_v5 = vadd.f32 %v964_v4, %v963_v2  ;;  %v449_v6 = vadd.f32 %v930_v3, %v379_v63 }
 0x175   :  { %v519_v7 = vadd.f32 %v965_v5, %v449_v6 }
 0x177   :  { %v522_v8 = vmax.f32 %v519_v7, 0.0 }
 0x179   :  { %1050 = vmatmul.mubr.f32.vlgmr.msra.gmra.mrb[4].mxu0 %v522_v8 }
 0x17a   :  { %1119 = vmatprep.mubr.msk.f32.mxu0 %vm1481_vm0, %v1482_v33  ;;  %1300 = vmatpush3.bf16.msra.mxu0 %v1299_v16  ;;  %v1317_v33 = vpack.c.bf16 %v724_v32, %v723_v31 }
 0x17b   :  { %1301 = vmatprep.subr.bf16.mxu0 %v1480_v11 }
 0x17e   :  { %1303 = vmatpush3.bf16.msra.mxu0 %v1302_v18 }
 0x17f   :  { %1304 = vmatprep.subr.bf16.mxu0 %v1480_v11 }
 0x182   :  { %1306 = vmatpush3.bf16.msra.mxu0 %v1305_v21 }
 0x183   :  { %1307 = vmatprep.subr.bf16.mxu0 %v1480_v11 }
 0x186   :  { %1309 = vmatpush3.bf16.msra.mxu0 %v1308_v24 }
 0x187   :  { %1310 = vmatprep.subr.bf16.mxu0 %v1480_v11 }
 0x18a   :  { %1312 = vmatpush3.bf16.msra.mxu0 %v1311_v27 }
 0x18b   :  { %1313 = vmatprep.subr.bf16.mxu0 %v1480_v11 }
 0x18e   :  { %1315 = vmatpush3.bf16.msra.mxu0 %v1314_v30 }
 0x18f   :  { %1316 = vmatprep.subr.bf16.mxu0 %v1480_v11 }
 0x192   :  { %1318 = vmatpush3.bf16.msra.mxu0 %v1317_v33 }
 0x193   :  { %1319 = vmatprep.subr.bf16.mxu0 %v1480_v11 }
 0x196   :  { %1321 = vmatpush3.bf16.msra.mxu0 %v1320_v41 }
 0x24c   :  { %v612_v35 = vpop.f32.mrb[4].mxu0 }
 0x24d   :  { %v613_v36 = vadd.f32 %v823_v34, %v612_v35  ;;  %v1051_v37 = vpop.f32.mrb[5].mxu0 }
 0x24f   :  { %v616_v38 = vmax.f32 %v613_v36, 0.0 }
 0x251   :  { %1085 = vmatmul.mubr.f32.vlgmr.msra.gmra.mrb[4].mxu1 %v616_v38 }
 0x324   :  { %v706_v43 = vpop.f32.mrb[4].mxu1 }
 0x325   :  { %v707_v44 = vadd.f32 %v824_v42, %v706_v43  ;;  %v1086_v11 = vpop.f32.mrb[5].mxu1 }
 0x327   :  { %v710_v45 = vmax.f32 %v707_v44, 0.0 }
 0x329   :  { %1120 = vmatmul.mubr.f32.vlgmr.msra.gmra.mrb[6].mxu0 %v710_v45 }
 0x3fc   :  { %v800_v47 = vpop.f32.mrb[6].mxu0 }
 0x3fd   :  { %v801_v48 = vadd.f32 %v825_v46, %v800_v47  ;;  %v1121_v49 = vpop.f32.mrb[7].mxu0 }
 0x3ff   :  { %804 = vst [vmem:[#allocation11] sm:$0xff] %v801_v48 }
 0x400   :  { %1454 = shalt.err (!%p1451_p2)
}
 0x401   :  { %s1455_s10 = scalar_lea.hbm %s1666_s9, 128 }
 0x402   :  { %p1456_p3 = scmp.ne.s32.totalorder %s1666_s9, %s1455_s10  ;;  %p1459_p4 = scmp.lt.u32.totalorder %s1455_s10, %s1666_s9 }
 0x404   :  { %p1461_p5 = pnand %p1459_p4, %p1456_p3 }
 0x406   :  { %1464 = shalt.err (!%p1461_p5)
}
 0x407   :  { %814 = dma.vmem_to_hbm [thread:$0]  %s812_s12, 128, %s1666_s9, [#allocation4]  }
 0x408   :  { %1471 = dma.done.wait [#allocation4], 128  }
 0x409   :  { %1472 = vsyncadd [#allocation4], 4294967168 }
 0x40a   :  { %818 = vsyncpa [#allocation3], 1 }
 0x40b   :  { %819 = vsyncpa [#allocation6], 1 }
 0x40c   :  { %820 = vsyncpa [#allocation9], 1 }
 0x40d   :  { %821 = vsyncpa [#allocation4], 1 }

</bundles_post_ra>
